<compile_context>
chip_gen: v5e
topology: v5e:2x2
jax: 0.10.0
libtpu: 0.0.40
codegen_flags: <defaults>
</compile_context>

<pallas_src>
import functools
import math

import jax
import jax.numpy as jnp
from jax import lax
from jax.experimental import pallas as pl
from jax.experimental.pallas import tpu as pltpu

_NEG_SLOPE = 0.01  # nn.LeakyReLU default negative_slope


def _leaky(x):
    return jnp.where(x >= 0.0, x, _NEG_SLOPE * x)


def _build_schedule(params, length, pool_step):
    """Static per-layer shape schedule mirroring the PyTorch forward."""
    sched = []
    L = length
    for (w, _) in params:
        C_out, C_in, K = w.shape
        pad = K // 2                           # math.floor(kernel_size / 2)
        L_conv = L + 2 * pad - (K - 1)         # stride-1 conv output length
        # PyTorch: `if h.shape[2] / pool_step < h.shape[1]: no pool` (float div)
        do_pool = not (L / pool_step < C_in)
        L_out = L_conv // pool_step if do_pool else L_conv
        sched.append(dict(C_in=C_in, C_out=C_out, K=K, pad=pad,
                          L_in=L, L_conv=L_conv, L_out=L_out, do_pool=do_pool))
        L = L_out
    return sched


def _encoder_kernel(*refs, schedule, pool_step, compute_dtype):
    """Fused encoder forward for one batch block (Bt elements).

    refs = [x, w_0, b_0, ..., w_{n-1}, b_{n-1},     # inputs
            h_out, idx_out_0, ..., idx_out_{p-1}]   # outputs (no scratch)

    Activations travel as (Bt, L, C): L on sublanes, C on lanes; the Bt batch
    rows are folded into the matmul M dimension of every conv.
    """
    n = len(schedule)
    n_pool = sum(1 for lyr in schedule if lyr["do_pool"])

    x_ref = refs[0]
    w_refs = [refs[1 + 2 * i] for i in range(n)]
    b_refs = [refs[2 + 2 * i] for i in range(n)]
    out_ref = refs[1 + 2 * n]
    idx_refs = list(refs[2 + 2 * n: 2 + 2 * n + n_pool])

    P = pool_step
    h = x_ref[...].astype(jnp.float32)          # (Bt, L0, C0)
    Bt = h.shape[0]
    pool_idx = 0

    for li, lyr in enumerate(schedule):         # static unroll over layers
        C_in, C_out, K = lyr["C_in"], lyr["C_out"], lyr["K"]
        pad, L_in = lyr["pad"], lyr["L_in"]
        L_conv, L_out = lyr["L_conv"], lyr["L_out"]

        # ---- value-level im2col (no VMEM scratch, no masked partial stores):
        #      xcol[b, l, k*C_in + c] = h_padded[b, l + k, c]
        h_c = h.astype(compute_dtype)
        taps = []
        for k in range(K):                       # static unroll over taps
            s = k - pad
            lo = max(0, -s)
            hi = max(lo, min(L_conv, L_in - s))
            parts = []
            if lo > 0:                           # leading pad fringe
                parts.append(jnp.zeros((Bt, lo, C_in), compute_dtype))
            if hi > lo:                          # valid interior rows
                parts.append(h_c[:, lo + s:hi + s, :])
            if L_conv > hi:                      # trailing pad fringe
                parts.append(jnp.zeros((Bt, L_conv - hi, C_in), compute_dtype))
            taps.append(parts[0] if len(parts) == 1
                        else jnp.concatenate(parts, axis=1))
        xcol = taps[0] if K == 1 else jnp.concatenate(taps, axis=-1)

        # ---- conv: ONE deep-contraction MXU matmul, M = Bt * L_conv ---------
        acc = jnp.dot(xcol.reshape(Bt * L_conv, K * C_in),
                      w_refs[li][...],
                      preferred_element_type=jnp.float32)
        acc = acc.reshape(Bt, L_conv, C_out) + b_refs[li][...]   # bias (1, C_out)

        if lyr["do_pool"]:
            # ---- MaxPool1d(P, stride=P, return_indices): value-level --------
            win = acc[:, :L_out * P, :].reshape(Bt, L_out, P, C_out)
            best = win[:, :, 0, :]
            best_off = jnp.zeros((Bt, L_out, C_out), jnp.int32)
            for p in range(1, P):                # static unroll; VPU cmp/select
                v = win[:, :, p, :]
                take = v > best                  # ties keep the earlier index
                best = jnp.where(take, v, best)
                best_off = jnp.where(take, jnp.int32(p), best_off)
            base = lax.broadcasted_iota(jnp.int32, (Bt, L_out, C_out), 1) * P
            idx_refs[pool_idx][...] = best_off + base
            pool_idx += 1
            h = _leaky(best)                     # (Bt, L_out, C_out) f32
        else:
            h = _leaky(acc)                      # (Bt, L_conv, C_out) f32

    out_ref[...] = h.astype(out_ref.dtype)


def encoder_forward(params, x, *, pool_step, compute_dtype=jnp.bfloat16,
                    block_b=None):
    """Fused encoder. x: (B, C_in0, L) -> (h (B, C_last, L_last), [idx ...])."""
    B, C0, L0 = x.shape
    sched = _build_schedule(params, L0, pool_step)

    # Batch blocking: fold Bt batch rows into the matmul M dim, but keep the
    # grid length >= 2 so dimension_semantics=("parallel",) can span both
    # TensorCores of a v7x chip (single-TC chips are unaffected).
    if block_b is None:
        Bt = 1
        for d in range(1, B + 1):
            if B % d == 0 and d <= 8 and B // d >= 2:
                Bt = d
    else:
        Bt = block_b
    assert B % Bt == 0, (B, Bt)

    # Internal layout is (B, L, C): the conv/pool length runs along sublanes so
    # batch rows stack cleanly into the matmul M dim.  One input/output
    # transpose at the HBM boundary (noise at these sizes).
    x_t = jnp.transpose(x, (0, 2, 1))                        # (B, L0, C0)

    flat_inputs = [x_t]
    in_specs = [pl.BlockSpec((Bt, L0, C0), lambda i: (i, 0, 0))]
    for lyr, (w, b) in zip(sched, params):
        C_in, C_out, K = lyr["C_in"], lyr["C_out"], lyr["K"]
        # (C_out, C_in, K) -> (K*C_in, C_out) with row k*C_in + c == w[:, c, k]
        w_r = jnp.transpose(w, (2, 1, 0)).reshape(K * C_in, C_out)
        flat_inputs.append(w_r.astype(compute_dtype))
        # Grid-invariant operands (index_map -> (0, 0)); pl.Buffered(1) could
        # reclaim their second pipeline buffer, skipped for build portability.
        in_specs.append(pl.BlockSpec((K * C_in, C_out), lambda i: (0, 0)))
        flat_inputs.append(b.reshape(1, C_out).astype(jnp.float32))
        in_specs.append(pl.BlockSpec((1, C_out), lambda i: (0, 0)))

    last = sched[-1]
    out_shape = [jax.ShapeDtypeStruct((B, last["L_out"], last["C_out"]), x.dtype)]
    out_specs = [pl.BlockSpec((Bt, last["L_out"], last["C_out"]),
                              lambda i: (i, 0, 0))]
    for lyr in sched:
        if lyr["do_pool"]:
            out_shape.append(
                jax.ShapeDtypeStruct((B, lyr["L_out"], lyr["C_out"]), jnp.int32))
            out_specs.append(
                pl.BlockSpec((Bt, lyr["L_out"], lyr["C_out"]),
                             lambda i: (i, 0, 0)))

    kernel = functools.partial(_encoder_kernel, schedule=sched,
                               pool_step=pool_step, compute_dtype=compute_dtype)

    outs = pl.pallas_call(
        kernel,
        out_shape=tuple(out_shape),
        grid=(B // Bt,),
        in_specs=in_specs,
        out_specs=tuple(out_specs),
        compiler_params=pltpu.CompilerParams(
            dimension_semantics=("parallel",)),
    )(*flat_inputs)

    h = jnp.transpose(outs[0], (0, 2, 1))                    # back to (B, C, L)
    idxs = [jnp.transpose(o, (0, 2, 1)) for o in outs[1:]]
    return h, idxs


def init_encoder_params(key, input_dim, kernel_size, num_layers):
    chan_pairs = []
    for i in range(num_layers - 1):
        chan_pairs.append((input_dim * 2 ** i, input_dim * 2 ** (i + 1)))
    chan_pairs.append((input_dim * 2 ** (num_layers - 1), input_dim))
    params = []
    for (c_in, c_out) in chan_pairs:
        key, kw, kb = jax.random.split(key, 3)
        bound = 1.0 / math.sqrt(c_in * kernel_size)  # ~PyTorch Conv1d default
        w = jax.random.uniform(kw, (c_out, c_in, kernel_size), jnp.float32,
                               -bound, bound)
        b = jax.random.uniform(kb, (c_out,), jnp.float32, -bound, bound)
        params.append((w, b))
    return params


def _ref_forward(params, x, *, pool_step, compute_dtype=jnp.bfloat16):
    """Pure-jnp reference mirroring the PyTorch forward (eval mode) with the
    same bf16 matmul operands / f32 accumulation as the kernel."""
    h = x
    indices = []
    for (w, b) in params:
        B, C_in, L = h.shape
        C_out, _, K = w.shape
        pad = K // 2
        hp = jnp.pad(h, ((0, 0), (0, 0), (pad, pad))).astype(compute_dtype)
        wl = w.astype(compute_dtype)
        L_conv = L + 2 * pad - (K - 1)
        y = jnp.zeros((B, C_out, L_conv), jnp.float32)
        for k in range(K):
            y = y + jnp.einsum("oc,bcl->bol", wl[:, :, k],
                               hp[:, :, k:k + L_conv],
                               preferred_element_type=jnp.float32)
        y = y + b[None, :, None]
        if not (L / pool_step < C_in):
            L_out = L_conv // pool_step
            win = y[:, :, :L_out * pool_step].reshape(B, C_out, L_out, pool_step)
            idx = jnp.argmax(win, axis=-1).astype(jnp.int32) + \
                (jnp.arange(L_out, dtype=jnp.int32) * pool_step)[None, None, :]
            y = jnp.max(win, axis=-1)
            indices.append(idx)
        h = jnp.where(y >= 0, y, _NEG_SLOPE * y)
    return h, indices


if __name__ == "__main__":
    key = jax.random.PRNGKey(0)
    input_dim, kernel_size, num_layers, pool_step = 4, 3, 3, 2
    B, L = 2, 16
    kx, kp = jax.random.split(key)
    x = jax.random.normal(kx, (B, input_dim, L), jnp.float32)
    params = init_encoder_params(kp, input_dim, kernel_size, num_layers)

    run = jax.jit(functools.partial(encoder_forward, pool_step=pool_step))
    h, idxs = run(params, x)
    h = jax.block_until_ready(h)
    idxs = [jax.block_until_ready(i) for i in idxs]

    h_ref, idxs_ref = _ref_forward(params, x, pool_step=pool_step)
    assert h.shape == h_ref.shape, (h.shape, h_ref.shape)
    # bf16 matmul operands / f32 accumulation on both sides -> loose tolerance.
    assert jnp.allclose(h, h_ref, atol=2e-2, rtol=2e-2), \
        float(jnp.max(jnp.abs(h - h_ref)))
    assert len(idxs) == len(idxs_ref)
    for a, b_ in zip(idxs, idxs_ref):
        assert a.shape == b_.shape, (a.shape, b_.shape)
        assert jnp.array_equal(a, b_)

    print("KERNEL_OK")
</pallas_src>

<mosaic_0001>
module attributes {stable_mosaic.version = 11 : i64} {
  func.func @_encoder_kernel(%arg0: i32, %arg1: memref<1x16x4xf32, #tpu.memory_space<vmem>>, %arg2: memref<12x8xbf16, #tpu.memory_space<vmem>>, %arg3: memref<1x8xf32, #tpu.memory_space<vmem>>, %arg4: memref<24x16xbf16, #tpu.memory_space<vmem>>, %arg5: memref<1x16xf32, #tpu.memory_space<vmem>>, %arg6: memref<48x4xbf16, #tpu.memory_space<vmem>>, %arg7: memref<1x4xf32, #tpu.memory_space<vmem>>, %arg8: memref<1x8x4xf32, #tpu.memory_space<vmem>>, %arg9: memref<1x8x8xi32, #tpu.memory_space<vmem>>) attributes {dimension_semantics = [#tpu.dimension_semantics<parallel>], iteration_bounds = array<i64: 2>, scalar_prefetch = 0 : i64, scratch_operands = 0 : i64, tpu.core_type = #tpu.core_type<tc>, window_params = [{transform_indices = @transform_0, window_bounds = array<i64: 1, 16, 4>}, {pipeline_mode = #tpu.pipeline_mode<synchronous>, transform_indices = @transform_1, window_bounds = array<i64: 12, 8>}, {pipeline_mode = #tpu.pipeline_mode<synchronous>, transform_indices = @transform_2, window_bounds = array<i64: 1, 8>}, {pipeline_mode = #tpu.pipeline_mode<synchronous>, transform_indices = @transform_3, window_bounds = array<i64: 24, 16>}, {pipeline_mode = #tpu.pipeline_mode<synchronous>, transform_indices = @transform_4, window_bounds = array<i64: 1, 16>}, {pipeline_mode = #tpu.pipeline_mode<synchronous>, transform_indices = @transform_5, window_bounds = array<i64: 48, 4>}, {pipeline_mode = #tpu.pipeline_mode<synchronous>, transform_indices = @transform_6, window_bounds = array<i64: 1, 4>}, {transform_indices = @transform_7, window_bounds = array<i64: 1, 8, 4>}, {transform_indices = @transform_8, window_bounds = array<i64: 1, 8, 8>}]} {
    %c0 = arith.constant 0 : index
    %c0_0 = arith.constant 0 : index
    %c0_1 = arith.constant 0 : index
    %0 = vector.load %arg1[%c0, %c0_0, %c0_1] : memref<1x16x4xf32, #tpu.memory_space<vmem>>, vector<1x16x4xf32>
    %1 = arith.truncf %0 : vector<1x16x4xf32> to vector<1x16x4xbf16>
    %cst = arith.constant 0.000000e+00 : bf16
    %2 = vector.broadcast %cst : bf16 to vector<1x1x4xbf16>
    %3 = vector.extract_strided_slice %1 {offsets = [0, 0, 0], sizes = [1, 15, 4], strides = [1, 1, 1]} : vector<1x16x4xbf16> to vector<1x15x4xbf16>
    %4 = tpu.concatenate %2, %3 in 1 : vector<1x1x4xbf16>, vector<1x15x4xbf16> -> vector<1x16x4xbf16>
    %5 = vector.extract_strided_slice %1 {offsets = [0, 1, 0], sizes = [1, 15, 4], strides = [1, 1, 1]} : vector<1x16x4xbf16> to vector<1x15x4xbf16>
    %cst_2 = arith.constant 0.000000e+00 : bf16
    %6 = vector.broadcast %cst_2 : bf16 to vector<1x1x4xbf16>
    %7 = tpu.concatenate %5, %6 in 1 : vector<1x15x4xbf16>, vector<1x1x4xbf16> -> vector<1x16x4xbf16>
    %8 = tpu.concatenate %4, %1, %7 in 2 : vector<1x16x4xbf16>, vector<1x16x4xbf16>, vector<1x16x4xbf16> -> vector<1x16x12xbf16>
    %9 = vector.shape_cast %8 : vector<1x16x12xbf16> to vector<16x12xbf16>
    %c0_3 = arith.constant 0 : index
    %c0_4 = arith.constant 0 : index
    %10 = vector.load %arg2[%c0_3, %c0_4] : memref<12x8xbf16, #tpu.memory_space<vmem>>, vector<12x8xbf16>
    %cst_5 = arith.constant dense<0.000000e+00> : vector<16x8xf32>
    %11 = tpu.matmul %9, %10, %cst_5 {dimension_numbers = #tpu.dot_dimension_numbers<[1], [0], [0], [1], [0, 0, 1, 1], [], []>} : vector<16x12xbf16>, vector<12x8xbf16>, vector<16x8xf32> -> vector<16x8xf32>
    %12 = vector.shape_cast %11 : vector<16x8xf32> to vector<1x16x8xf32>
    %c0_6 = arith.constant 0 : index
    %c0_7 = arith.constant 0 : index
    %13 = vector.load %arg3[%c0_6, %c0_7] : memref<1x8xf32, #tpu.memory_space<vmem>>, vector<1x8xf32>
    %14 = vector.shape_cast %13 : vector<1x8xf32> to vector<1x1x8xf32>
    %15 = vector.broadcast %14 : vector<1x1x8xf32> to vector<1x16x8xf32>
    %16 = arith.addf %12, %15 : vector<1x16x8xf32>
    %17 = vector.shape_cast %16 : vector<1x16x8xf32> to vector<1x8x2x8xf32>
    %18 = vector.extract_strided_slice %17 {offsets = [0, 0, 0, 0], sizes = [1, 8, 1, 8], strides = [1, 1, 1, 1]} : vector<1x8x2x8xf32> to vector<1x8x1x8xf32>
    %19 = vector.shape_cast %18 : vector<1x8x1x8xf32> to vector<1x8x8xf32>
    %c0_i32 = arith.constant 0 : i32
    %20 = vector.broadcast %c0_i32 : i32 to vector<1x8x8xi32>
    %21 = vector.extract_strided_slice %17 {offsets = [0, 0, 1, 0], sizes = [1, 8, 1, 8], strides = [1, 1, 1, 1]} : vector<1x8x2x8xf32> to vector<1x8x1x8xf32>
    %22 = vector.shape_cast %21 : vector<1x8x1x8xf32> to vector<1x8x8xf32>
    %23 = arith.cmpf ogt, %22, %19 : vector<1x8x8xf32>
    %24 = arith.select %23, %22, %19 : vector<1x8x8xi1>, vector<1x8x8xf32>
    %c1_i32 = arith.constant 1 : i32
    %25 = vector.broadcast %c1_i32 : i32 to vector<1x8x8xi32>
    %26 = arith.select %23, %25, %20 : vector<1x8x8xi1>, vector<1x8x8xi32>
    %27 = tpu.iota {dimensions = array<i32: 1>} : vector<1x8x8xi32>
    %c2_i32 = arith.constant 2 : i32
    %28 = vector.broadcast %c2_i32 : i32 to vector<1x8x8xi32>
    %29 = arith.muli %27, %28 : vector<1x8x8xi32>
    %30 = arith.addi %26, %29 : vector<1x8x8xi32>
    %c0_8 = arith.constant 0 : index
    %c0_9 = arith.constant 0 : index
    %c0_10 = arith.constant 0 : index
    %31 = vector.load %arg9[%c0_8, %c0_9, %c0_10] : memref<1x8x8xi32, #tpu.memory_space<vmem>>, vector<1x8x8xi32>
    tpu.vector_store %arg9[%c0_8, %c0_9, %c0_10], %30 {strides = array<i32>} : memref<1x8x8xi32, #tpu.memory_space<vmem>>, vector<1x8x8xi32>,
    %cst_11 = arith.constant 0.000000e+00 : f32
    %32 = vector.broadcast %cst_11 : f32 to vector<1x8x8xf32>
    %33 = arith.cmpf oge, %24, %32 : vector<1x8x8xf32>
    %cst_12 = arith.constant 0.00999999977 : f32
    %34 = vector.broadcast %cst_12 : f32 to vector<1x8x8xf32>
    %35 = arith.mulf %34, %24 : vector<1x8x8xf32>
    %36 = arith.select %33, %24, %35 : vector<1x8x8xi1>, vector<1x8x8xf32>
    %37 = arith.truncf %36 : vector<1x8x8xf32> to vector<1x8x8xbf16>
    %cst_13 = arith.constant 0.000000e+00 : bf16
    %38 = vector.broadcast %cst_13 : bf16 to vector<1x1x8xbf16>
    %39 = vector.extract_strided_slice %37 {offsets = [0, 0, 0], sizes = [1, 7, 8], strides = [1, 1, 1]} : vector<1x8x8xbf16> to vector<1x7x8xbf16>
    %40 = tpu.concatenate %38, %39 in 1 : vector<1x1x8xbf16>, vector<1x7x8xbf16> -> vector<1x8x8xbf16>
    %41 = vector.extract_strided_slice %37 {offsets = [0, 1, 0], sizes = [1, 7, 8], strides = [1, 1, 1]} : vector<1x8x8xbf16> to vector<1x7x8xbf16>
    %cst_14 = arith.constant 0.000000e+00 : bf16
    %42 = vector.broadcast %cst_14 : bf16 to vector<1x1x8xbf16>
    %43 = tpu.concatenate %41, %42 in 1 : vector<1x7x8xbf16>, vector<1x1x8xbf16> -> vector<1x8x8xbf16>
    %44 = tpu.concatenate %40, %37, %43 in 2 : vector<1x8x8xbf16>, vector<1x8x8xbf16>, vector<1x8x8xbf16> -> vector<1x8x24xbf16>
    %45 = vector.shape_cast %44 : vector<1x8x24xbf16> to vector<8x24xbf16>
    %c0_15 = arith.constant 0 : index
    %c0_16 = arith.constant 0 : index
    %46 = vector.load %arg4[%c0_15, %c0_16] : memref<24x16xbf16, #tpu.memory_space<vmem>>, vector<24x16xbf16>
    %cst_17 = arith.constant dense<0.000000e+00> : vector<8x16xf32>
    %47 = tpu.matmul %45, %46, %cst_17 {dimension_numbers = #tpu.dot_dimension_numbers<[1], [0], [0], [1], [0, 0, 1, 1], [], []>} : vector<8x24xbf16>, vector<24x16xbf16>, vector<8x16xf32> -> vector<8x16xf32>
    %48 = vector.shape_cast %47 : vector<8x16xf32> to vector<1x8x16xf32>
    %c0_18 = arith.constant 0 : index
    %c0_19 = arith.constant 0 : index
    %49 = vector.load %arg5[%c0_18, %c0_19] : memref<1x16xf32, #tpu.memory_space<vmem>>, vector<1x16xf32>
    %50 = vector.shape_cast %49 : vector<1x16xf32> to vector<1x1x16xf32>
    %51 = vector.broadcast %50 : vector<1x1x16xf32> to vector<1x8x16xf32>
    %52 = arith.addf %48, %51 : vector<1x8x16xf32>
    %cst_20 = arith.constant 0.000000e+00 : f32
    %53 = vector.broadcast %cst_20 : f32 to vector<1x8x16xf32>
    %54 = arith.cmpf oge, %52, %53 : vector<1x8x16xf32>
    %cst_21 = arith.constant 0.00999999977 : f32
    %55 = vector.broadcast %cst_21 : f32 to vector<1x8x16xf32>
    %56 = arith.mulf %55, %52 : vector<1x8x16xf32>
    %57 = arith.select %54, %52, %56 : vector<1x8x16xi1>, vector<1x8x16xf32>
    %58 = arith.truncf %57 : vector<1x8x16xf32> to vector<1x8x16xbf16>
    %cst_22 = arith.constant 0.000000e+00 : bf16
    %59 = vector.broadcast %cst_22 : bf16 to vector<1x1x16xbf16>
    %60 = vector.extract_strided_slice %58 {offsets = [0, 0, 0], sizes = [1, 7, 16], strides = [1, 1, 1]} : vector<1x8x16xbf16> to vector<1x7x16xbf16>
    %61 = tpu.concatenate %59, %60 in 1 : vector<1x1x16xbf16>, vector<1x7x16xbf16> -> vector<1x8x16xbf16>
    %62 = vector.extract_strided_slice %58 {offsets = [0, 1, 0], sizes = [1, 7, 16], strides = [1, 1, 1]} : vector<1x8x16xbf16> to vector<1x7x16xbf16>
    %cst_23 = arith.constant 0.000000e+00 : bf16
    %63 = vector.broadcast %cst_23 : bf16 to vector<1x1x16xbf16>
    %64 = tpu.concatenate %62, %63 in 1 : vector<1x7x16xbf16>, vector<1x1x16xbf16> -> vector<1x8x16xbf16>
    %65 = tpu.concatenate %61, %58, %64 in 2 : vector<1x8x16xbf16>, vector<1x8x16xbf16>, vector<1x8x16xbf16> -> vector<1x8x48xbf16>
    %66 = vector.shape_cast %65 : vector<1x8x48xbf16> to vector<8x48xbf16>
    %c0_24 = arith.constant 0 : index
    %c0_25 = arith.constant 0 : index
    %67 = vector.load %arg6[%c0_24, %c0_25] : memref<48x4xbf16, #tpu.memory_space<vmem>>, vector<48x4xbf16>
    %cst_26 = arith.constant dense<0.000000e+00> : vector<8x4xf32>
    %68 = tpu.matmul %66, %67, %cst_26 {dimension_numbers = #tpu.dot_dimension_numbers<[1], [0], [0], [1], [0, 0, 1, 1], [], []>} : vector<8x48xbf16>, vector<48x4xbf16>, vector<8x4xf32> -> vector<8x4xf32>
    %69 = vector.shape_cast %68 : vector<8x4xf32> to vector<1x8x4xf32>
    %c0_27 = arith.constant 0 : index
    %c0_28 = arith.constant 0 : index
    %70 = vector.load %arg7[%c0_27, %c0_28] : memref<1x4xf32, #tpu.memory_space<vmem>>, vector<1x4xf32>
    %71 = vector.shape_cast %70 : vector<1x4xf32> to vector<1x1x4xf32>
    %72 = vector.broadcast %71 : vector<1x1x4xf32> to vector<1x8x4xf32>
    %73 = arith.addf %69, %72 : vector<1x8x4xf32>
    %cst_29 = arith.constant 0.000000e+00 : f32
    %74 = vector.broadcast %cst_29 : f32 to vector<1x8x4xf32>
    %75 = arith.cmpf oge, %73, %74 : vector<1x8x4xf32>
    %cst_30 = arith.constant 0.00999999977 : f32
    %76 = vector.broadcast %cst_30 : f32 to vector<1x8x4xf32>
    %77 = arith.mulf %76, %73 : vector<1x8x4xf32>
    %78 = arith.select %75, %73, %77 : vector<1x8x4xi1>, vector<1x8x4xf32>
    %c0_31 = arith.constant 0 : index
    %c0_32 = arith.constant 0 : index
    %c0_33 = arith.constant 0 : index
    %79 = vector.load %arg8[%c0_31, %c0_32, %c0_33] : memref<1x8x4xf32, #tpu.memory_space<vmem>>, vector<1x8x4xf32>
    tpu.vector_store %arg8[%c0_31, %c0_32, %c0_33], %78 {strides = array<i32>} : memref<1x8x4xf32, #tpu.memory_space<vmem>>, vector<1x8x4xf32>,
    return
  }
  func.func @transform_0(%arg0: i32) -> (i32, i32, i32) {
    %c0_i32 = arith.constant 0 : i32
    %c0_i32_0 = arith.constant 0 : i32
    %c0_i32_1 = arith.constant 0 : i32
    return %arg0, %c0_i32, %c0_i32_0 : i32, i32, i32
  }
  func.func @transform_1(%arg0: i32) -> (i32, i32) {
    %c0_i32 = arith.constant 0 : i32
    %c0_i32_0 = arith.constant 0 : i32
    %c0_i32_1 = arith.constant 0 : i32
    return %c0_i32, %c0_i32_0 : i32, i32
  }
  func.func @transform_2(%arg0: i32) -> (i32, i32) {
    %c0_i32 = arith.constant 0 : i32
    %c0_i32_0 = arith.constant 0 : i32
    %c0_i32_1 = arith.constant 0 : i32
    return %c0_i32, %c0_i32_0 : i32, i32
  }
  func.func @transform_3(%arg0: i32) -> (i32, i32) {
    %c0_i32 = arith.constant 0 : i32
    %c0_i32_0 = arith.constant 0 : i32
    %c0_i32_1 = arith.constant 0 : i32
    return %c0_i32, %c0_i32_0 : i32, i32
  }
  func.func @transform_4(%arg0: i32) -> (i32, i32) {
    %c0_i32 = arith.constant 0 : i32
    %c0_i32_0 = arith.constant 0 : i32
    %c0_i32_1 = arith.constant 0 : i32
    return %c0_i32, %c0_i32_0 : i32, i32
  }
  func.func @transform_5(%arg0: i32) -> (i32, i32) {
    %c0_i32 = arith.constant 0 : i32
    %c0_i32_0 = arith.constant 0 : i32
    %c0_i32_1 = arith.constant 0 : i32
    return %c0_i32, %c0_i32_0 : i32, i32
  }
  func.func @transform_6(%arg0: i32) -> (i32, i32) {
    %c0_i32 = arith.constant 0 : i32
    %c0_i32_0 = arith.constant 0 : i32
    %c0_i32_1 = arith.constant 0 : i32
    return %c0_i32, %c0_i32_0 : i32, i32
  }
  func.func @transform_7(%arg0: i32) -> (i32, i32, i32) {
    %c0_i32 = arith.constant 0 : i32
    %c0_i32_0 = arith.constant 0 : i32
    %c0_i32_1 = arith.constant 0 : i32
    return %arg0, %c0_i32, %c0_i32_0 : i32, i32, i32
  }
  func.func @transform_8(%arg0: i32) -> (i32, i32, i32) {
    %c0_i32 = arith.constant 0 : i32
    %c0_i32_0 = arith.constant 0 : i32
    %c0_i32_1 = arith.constant 0 : i32
    return %arg0, %c0_i32, %c0_i32_0 : i32, i32, i32
  }
}

</mosaic_0001>

<bundles_post_ra>
// kernel: encoder_forward.1
= control target key start
LH: loop header
LB: loop body
LE: loop exit
PB: predicated region body
PF: predicated region fallthrough
CT: control target
= control target key end

     0   :  { %s954_s27 = smov 0   ;;  %s1110_s0 = inlined_call_operand.vmem [shape: f32[2,16,4], index: 0, kind: input, shape index: {}]   ;;  %s1111_s1 = inlined_call_operand.vmem [shape: bf16[12,8], index: 1, kind: input, shape index: {}]   ;;  %s1112_s2 = inlined_call_operand.vmem [shape: f32[1,8], index: 2, kind: input, shape index: {}]   ;;  %s1113_s3 = inlined_call_operand.vmem [shape: bf16[24,16], index: 3, kind: input, shape index: {}]   ;;  %s1114_s4 = inlined_call_operand.vmem [shape: f32[1,16], index: 4, kind: input, shape index: {}]   ;;  %s1115_s5 = inlined_call_operand.vmem [shape: bf16[48,4], index: 5, kind: input, shape index: {}]   ;;  %s1116_s6 = inlined_call_operand.vmem [shape: f32[1,4], index: 6, kind: input, shape index: {}]   ;;  %s1117_s7 = inlined_call_operand.vmem [shape: f32[2,8,4], index: 7, kind: output, shape index: {0}]   ;;  %s1118_s8 = inlined_call_operand.vmem [shape: s32[2,8,8], index: 8, kind: output, shape index: {1}]  }
   0x1 LB: > { %s824_s28 = sadd.s32 4294967295, %s898_s27   ;;  %p828_p0 = scmp.ge.s32.totalorder %s898_s27, 1  ;;  %s898_s27 = sphi %s954_s27, %s19_s27  }
   0x2   : > { %p265_p1 = scmp.lt.s32.totalorder %s898_s27, 3 }
   0x4   : > { %p266_p2 = pnand %p828_p0, %p265_p1 }
   0x5   : > { %p302_p3 = scmp.lt.s32.totalorder (!%p266_p2), %s824_s28, 1  ;;  %s900_s11 = smov (!%p266_p2), 4  }
   0x6   : > { %269 = sbr.rel (%p266_p2) target bundleno = 813 (0x32d), region = 48  ;;  %s901_s12 = smov (!%p266_p2), 8  }
   0x7   : > { %s907_s23 = smov (!%p266_p2), 16  }
   0xb   : > { %s1134_s28 = smov (!%p302_p3, %s824_s28), 1  ;;  %vm340_vm0 = vcmask 1047552   ;;  %vm341_vm1 = vsmask.f32 7424  ;;  %v835_v12 = vld [vmem:[%s1111_s1] sm:$0xf]  ;;  %v444_v24 = vlaneseq }
   0xc   : > { %s866_s29 = sshll.u32 %s1134_s28, 4  ;;  %vm342_vm2 = vmand %vm340_vm0, %vm341_vm1  ;;  %v867_v13 = vld [vmem:[%s1111_s1] sm:$0x30]  ;;  %vm366_vm3 = vcmask 1045504   ;;  %vm333_vm4 = vcmask 1040384   ;;  %vm1119_vm7 = vcmask 31744  }
   0xd   : > { %s306_s10 = scalar_lea.vmem %s1110_s0, %s866_s29  ;;  %v836_v14 = vor.u32 %v867_v13, %v835_v12  ;;  %vm334_vm5 = vsmask.f32 256  ;;  %vm1120_vm8 = vcmask 64512   ;;  %vm363_vm9 = vcmask 97280   ;;  %v889_v37 = vld [vmem:[%s1112_s2] ss:$0 sm:$0xff] }
   0xe   : > { %v316_v0 = vld [vmem:[%s306_s10] sm:$0xff]  ;;  %v317_v1 = vld [vmem:[%s306_s10 + $0x8] sm:$0xff]  ;;  %vm975_vm6 = vmand %vm333_vm4, %vm334_vm5  ;;  %v445_v25 = vshrl.u32 %v444_v24, 7  ;;  %v902_v26 = vmov 269488144   ;;  %v906_v56 = vmov 0  }
   0xf   : > { %v318_v2 = vpack.c.bf16 %v316_v0, %v316_v0  ;;  %v319_v3 = vpack.c.bf16 %v317_v1, %v317_v1  ;;  %v368_v15 = vsel %vm366_vm3, %v836_v14, 0  ;;  %v448_v27 = vunpack.c.l.s4 %v902_v26  ;;  %s831_s19 = sshll.u32 %s1134_s28, 3 }
  0x10   : > { %377 = vmatpush.bf16.msra.mxu0 %v368_v15  ;;  %v903_v28 = vmov 842150450   ;;  %v446_v30 = vmul.u32 2, %v445_v25  ;;  %v904_v32 = vmov 1414812756   ;;  %vm1121_vm15 = vcmask 1042434   ;;  %s314_s22 = scalar_lea.vmem %s1118_s8, %s831_s19 }
  0x11   : > { %v322_v4 = vunpack.c.l.b16 %v318_v2  ;;  %v323_v5 = vunpack.c.l.b16 %v319_v3  ;;  %v452_v29 = vunpack.c.l.s4 %v903_v28  ;;  %v449_v31 = vunpack.c.0.s8 %v448_v27 }
  0x12   : > { %v456_v33 = vunpack.c.l.s4 %v904_v32  ;;  %v905_v34 = vmov 1987475062   ;;  %vm485_vm0 = vcmask 1043459   ;;  %vm487_vm1 = vcmask 1044484  }
  0x13   : > { %v324_v6 = vpack.c.b16 %v323_v5, %v322_v4  ;;  %v460_v35 = vunpack.c.l.s4 %v905_v34  ;;  %v453_v36 = vunpack.c.0.s8 %v452_v29  ;;  %v450_v38 = vperm.slane %v446_v30, %v449_v31 }
  0x14   : > { %v457_v39 = vunpack.c.0.s8 %v456_v33  ;;  %vm497_vm3 = vcmask 57344   ;;  %vm491_vm4 = vcmask 1046534  }
  0x15   : > { %344 = vrot.lane.b32.xlu0 %v324_v6, %s900_s11  ;;  %v326_v7 = vshrl.u32 %v324_v6, 16  ;;  %v329_v8 = vshll.u32 %v324_v6, 16  ;;  %v461_v40 = vunpack.c.0.s8 %v460_v35  ;;  %v454_v42 = vperm.slane %v446_v30, %v453_v36 }
  0x16   : > { %v463_v44 = vrot.slane %v450_v38, 7  ;;  %v986_v45 = vperm.slane %v446_v30, %v457_v39 }
  0x17   : > { %v337_v9 = vrot.slane %v329_v8, 1  ;;  %v328_v16 = vrot.slane %v326_v7, 7  ;;  %v988_v46 = vperm.slane %v446_v30, %v461_v40  ;;  %v464_v51 = vrot.slane %v454_v42, 7 }
  0x18   : > { %v465_v58 = vrot.slane %v986_v45, 7 }
  0x19   : > { %v338_v10 = vor.u32 %v337_v9, %v326_v7  ;;  %v331_v18 = vor.u32 %v329_v8, %v328_v16  ;;  %v466_v59 = vrot.slane %v988_v46, 7 }
  0x1b   : > { %v343_v11 = vsel %vm342_vm2, %v338_v10, 0  ;;  %v336_v20 = vsel %vm975_vm6, 0, %v331_v18  ;;  %vm489_vm2 = vcmask 1045509  }
  0x1d   : > { %347 = vrot.lane.b32.xlu0 %v343_v11, %s901_s12 }
  0x87   : > { %v345_v17 = vpop.permute.xlu0 %344 }
  0x88   : > { %v352_v21 = vsel %vm1119_vm7, %v336_v20, %v345_v17 }
  0x8f   : > { %v348_v22 = vpop.permute.xlu0 %347 }
  0x90   : > { %v355_v23 = vsel %vm1120_vm8, %v352_v21, %v348_v22  ;;  %vm579_vm8 = vcmask 1041409  }
  0x91   : > { %837 = vmatmul.msk.bf16.vlgmr.msra.gmra.mxu0 %vm363_vm9, %v355_v23  ;;  %vm493_vm9 = vcmask 1047559  }
 0x10e   : > { %v379_v41 = vpop.f32.mrf.mxu0 }
 0x10f   : > { %v388_v43 = vadd.f32 %v889_v37, %v379_v41 }
 0x111   : > { %v392_v47 = vrot.slane %v388_v43, 2  ;;  %v393_v48 = vrot.slane %v388_v43, 4  ;;  %v394_v49 = vrot.slane %v388_v43, 6  ;;  %v404_v50 = vrot.slane %v388_v43, 7 }
 0x113   : > { %v405_v52 = vrot.slane %v392_v47, 7  ;;  %v406_v53 = vrot.slane %v393_v48, 7  ;;  %vm420_vm10 = vcmp.gt.f32.partialorder %v388_v43, %v404_v50  ;;  %v407_v54 = vrot.slane %v394_v49, 7 }
 0x114   : > { %v428_v55 = vsel %vm420_vm10, %v388_v43, %v404_v50  ;;  %v436_v57 = vsel %vm420_vm10, 1, %v906_v56  ;;  %vm495_vm10 = vcmask 64513  }
 0x115   : > { %vm421_vm11 = vcmp.gt.f32.partialorder %v392_v47, %v405_v52  ;;  %v467_v60 = vadd.s32 %v463_v44, %v436_v57  ;;  %vm499_vm12 = vcmp.ge.f32.partialorder %v428_v55, 0.0  ;;  %v507_v61 = vmul.f32 0.01, %v428_v55 }
 0x116   : > { %v992_v62 = vsel %vm421_vm11, %v392_v47, %v405_v52  ;;  %v381_v63 = vpop.f32.mrf.mxu0  ;;  %vm422_vm13 = vcmp.gt.f32.partialorder %v393_v48, %v406_v53  ;;  %vm994_vm14 = vcmp.gt.f32.partialorder %v394_v49, %v407_v54  ;;  %v437_v1 = vsel %vm421_vm11, 1, %v906_v56 }
 0x117   : > { %v475_v2 = vperm.slane %v467_v60, 1  ;;  %v999_v3 = vmul.f32 0.01, %v992_v62  ;;  %v515_v4 = vsel %vm499_vm12, %v428_v55, %v507_v61  ;;  %v389_v5 = vadd.f32 %v889_v37, %v381_v63 }
 0x118   : > { %v523_v6 = vpack.c.bf16 %v515_v4, %v515_v4  ;;  %v1001_v7 = vsel %vm422_vm13, %v393_v48, %v406_v53  ;;  %v1005_v8 = vsel %vm994_vm14, %v394_v49, %v407_v54  ;;  %v438_v9 = vsel %vm422_vm13, 1, %v906_v56 }
 0x119   : > { %v395_v10 = vrot.slane %v389_v5, 2  ;;  %v408_v11 = vrot.slane %v389_v5, 7  ;;  %v396_v12 = vrot.slane %v389_v5, 4  ;;  %v397_v13 = vrot.slane %v389_v5, 6 }
 0x11a   : > { %v1007_v14 = vunpack.c.l.b16 %v523_v6  ;;  %v439_v15 = vsel %vm994_vm14, 1, %v906_v56  ;;  %v468_v16 = vadd.s32 %v450_v38, %v437_v1  ;;  %v469_v17 = vadd.s32 %v464_v51, %v438_v9 }
 0x11b   : > { %v409_v18 = vrot.slane %v395_v10, 7  ;;  %v410_v20 = vrot.slane %v396_v12, 7  ;;  %v411_v21 = vrot.slane %v397_v13, 7  ;;  %vm424_vm5 = vcmp.gt.f32.partialorder %v389_v5, %v408_v11 }
 0x11c   : > { %v432_v22 = vsel %vm424_vm5, %v389_v5, %v408_v11  ;;  %v440_v23 = vsel %vm424_vm5, 1, %v906_v56  ;;  %v470_v24 = vadd.s32 %v454_v42, %v439_v15  ;;  %v476_v25 = vperm.slane %v468_v16, 1 }
 0x11d   : > { %vm425_vm11 = vcmp.gt.f32.partialorder %v395_v10, %v409_v18  ;;  %vm426_vm12 = vcmp.gt.f32.partialorder %v396_v12, %v410_v20  ;;  %vm427_vm13 = vcmp.gt.f32.partialorder %v397_v13, %v411_v21  ;;  %v471_v26 = vadd.s32 %v465_v58, %v440_v23 }
 0x11e   : > { %v433_v27 = vsel %vm425_vm11, %v395_v10, %v409_v18  ;;  %v434_v28 = vsel %vm426_vm12, %v396_v12, %v410_v20  ;;  %v435_v29 = vsel %vm427_vm13, %v397_v13, %v411_v21  ;;  %v441_v30 = vsel %vm425_vm11, 1, %v906_v56 }
 0x11f   : > { %v442_v31 = vsel %vm426_vm12, 1, %v906_v56  ;;  %v443_v32 = vsel %vm427_vm13, 1, %v906_v56  ;;  %v472_v33 = vadd.s32 %v986_v45, %v441_v30  ;;  %v477_v34 = vperm.slane %v469_v17, 1 }
 0x120   : > { %v473_v35 = vadd.s32 %v466_v59, %v442_v31  ;;  %v474_v36 = vadd.s32 %v988_v46, %v443_v32  ;;  %v478_v37 = vperm.slane %v470_v24, 1  ;;  %v479_v38 = vperm.slane %v471_v26, 1 }
 0x121   : > { %v480_v39 = vperm.slane %v472_v33, 1  ;;  %v484_v40 = vsel %vm1121_vm15, %v476_v25, %v475_v2  ;;  %vm500_vm14 = vcmp.ge.f32.partialorder %v992_v62, 0.0  ;;  %vm501_vm5 = vcmp.ge.f32.partialorder %v1001_v7, 0.0 }
 0x122   : > { %v481_v41 = vperm.slane %v473_v35, 1  ;;  %v482_v42 = vperm.slane %v474_v36, 1  ;;  %v486_v43 = vsel %vm485_vm0, %v477_v34, %v484_v40  ;;  %vm502_vm11 = vcmp.ge.f32.partialorder %v1005_v8, 0.0 }
 0x123   : > { %v488_v44 = vsel %vm487_vm1, %v478_v37, %v486_v43  ;;  %vm503_vm12 = vcmp.ge.f32.partialorder %v432_v22, 0.0  ;;  %vm504_vm13 = vcmp.ge.f32.partialorder %v433_v27, 0.0  ;;  %vm505_vm7 = vcmp.ge.f32.partialorder %v434_v28, 0.0 }
 0x124   : > { %v490_v45 = vsel %vm489_vm2, %v479_v38, %v488_v44  ;;  %498 = vst.msk [vmem:[%s314_s22 + $0x7] sm:$0x1] %vm497_vm3, %v482_v42  ;;  %vm506_vm15 = vcmp.ge.f32.partialorder %v435_v29, 0.0  ;;  %v509_v46 = vmul.f32 0.01, %v1001_v7  ;;  %v516_v47 = vsel %vm500_vm14, %v992_v62, %v999_v3 }
 0x125   : > { %v492_v48 = vsel %vm491_vm4, %v480_v39, %v490_v45  ;;  %v510_v49 = vmul.f32 0.01, %v1005_v8  ;;  %v511_v50 = vmul.f32 0.01, %v432_v22  ;;  %v512_v51 = vmul.f32 0.01, %v433_v27 }
 0x126   : > { %v494_v52 = vsel %vm493_vm9, %v481_v41, %v492_v48  ;;  %v513_v53 = vmul.f32 0.01, %v434_v28  ;;  %v514_v54 = vmul.f32 0.01, %v435_v29  ;;  %v517_v55 = vsel %vm501_vm5, %v1001_v7, %v509_v46 }
 0x127   : > { %496 = vst.msk [vmem:[%s314_s22 - $0x1] sm:$0xfe] %vm495_vm10, %v494_v52  ;;  %v518_v56 = vsel %vm502_vm11, %v1005_v8, %v510_v49  ;;  %v519_v57 = vsel %vm503_vm12, %v432_v22, %v511_v50  ;;  %v520_v58 = vsel %vm504_vm13, %v433_v27, %v512_v51  ;;  %v524_v59 = vpack.c.bf16 %v516_v47, %v516_v47  ;;  %s310_s22 = scalar_lea.vmem %s1117_s7, %s831_s19 }
 0x128   : > { %v521_v60 = vsel %vm505_vm7, %v434_v28, %v513_v53  ;;  %v522_v61 = vsel %vm506_vm15, %v435_v29, %v514_v54  ;;  %v525_v62 = vpack.c.bf16 %v517_v55, %v517_v55  ;;  %v526_v63 = vpack.c.bf16 %v518_v56, %v518_v56 }
 0x129   : > { %v527_v0 = vpack.c.bf16 %v519_v57, %v519_v57  ;;  %v528_v1 = vpack.c.bf16 %v520_v58, %v520_v58  ;;  %v529_v2 = vpack.c.bf16 %v521_v60, %v521_v60  ;;  %v530_v3 = vpack.c.bf16 %v522_v61, %v522_v61 }
 0x12a   : > { %v539_v4 = vunpack.c.l.b16 %v524_v59  ;;  %v540_v5 = vunpack.c.l.b16 %v525_v62  ;;  %v541_v6 = vunpack.c.l.b16 %v526_v63  ;;  %v838_v7 = vunpack.i.l.s16 %v1007_v14  ;;  %v625_v62 = vld [vmem:[%s1113_s3 + $0x8] sm:$0xf] }
 0x12b   : > { %v542_v8 = vunpack.c.l.b16 %v527_v0  ;;  %v543_v9 = vunpack.c.l.b16 %v528_v1  ;;  %v544_v10 = vunpack.c.l.b16 %v529_v2  ;;  %v575_v11 = vunpack.c.l.b16 %v530_v3  ;;  %v868_v2 = vld [vmem:[%s1113_s3] sm:$0xff] }
 0x12c   : > { %v839_v12 = vunpack.i.l.s16 %v539_v4  ;;  %v840_v13 = vunpack.i.l.s16 %v540_v5  ;;  %v841_v15 = vunpack.i.l.s16 %v541_v6  ;;  %v597_v16 = vrot.slane %v838_v7, 1 }
 0x12d   : > { %v842_v17 = vunpack.i.l.s16 %v542_v8  ;;  %v843_v18 = vunpack.i.l.s16 %v543_v9  ;;  %v844_v20 = vunpack.i.l.s16 %v544_v10  ;;  %v845_v21 = vunpack.i.l.s16 %v575_v11  ;;  %v871_v9 = vld [vmem:[%s1115_s5 + $0x10] sm:$0xff]  ;;  %v890_v10 = vld [vmem:[%s1114_s4] ss:$0 sm:$0xff] }
 0x12e   : > { %v598_v22 = vsel %vm579_vm8, %v839_v12, %v597_v16  ;;  %v599_v23 = vrot.slane %v840_v13, 7  ;;  %v601_v24 = vrot.slane %v841_v15, 6  ;;  %v578_v25 = vrot.slane %v839_v12, 1  ;;  %723 = vmatpush.bf16.msra.mxu2 %v871_v9 }
 0x12f   : > { %v603_v26 = vrot.slane %v842_v17, 5  ;;  %v605_v27 = vrot.slane %v843_v18, 4  ;;  %v607_v14 = vrot.slane %v844_v20, 3  ;;  %vm1126_vm7 = vcmask 1042434  }
 0x130   : > { %v600_v28 = vsel %vm1126_vm7, %v599_v23, %v598_v22  ;;  %v580_v29 = vsel %vm579_vm8, %v840_v13, %v578_v25  ;;  %v581_v30 = vrot.slane %v841_v15, 7  ;;  %v583_v31 = vrot.slane %v842_v17, 6  ;;  %vm1127_vm15 = vmmov %vm1126_vm7 }
 0x131   : > { %v602_v32 = vsel %vm485_vm0, %v601_v24, %v600_v28  ;;  %v585_v33 = vrot.slane %v843_v18, 5  ;;  %v587_v34 = vrot.slane %v844_v20, 4  ;;  %v609_v36 = vrot.slane %v845_v21, 2  ;;  %vm1128_vm8 = vmmov %vm1126_vm7  ;;  %v869_v28 = vld [vmem:[%s1115_s5] sm:$0xff] }
 0x132   : > { %v604_v35 = vsel %vm487_vm1, %v603_v26, %v602_v32  ;;  %v582_v37 = vsel %vm1127_vm15, %v581_v30, %v580_v29  ;;  %v559_v40 = vrot.slane %v839_v12, 7  ;;  %v561_v41 = vrot.slane %v840_v13, 6 }
 0x133   : > { %v606_v38 = vsel %vm489_vm2, %v605_v27, %v604_v35  ;;  %v584_v39 = vsel %vm485_vm0, %v583_v31, %v582_v37  ;;  %v589_v44 = vrot.slane %v845_v21, 3  ;;  %v565_v45 = vrot.slane %v842_v17, 4 }
 0x134   : > { %v608_v42 = vsel %vm491_vm4, %v607_v14, %v606_v38  ;;  %v586_v43 = vsel %vm487_vm1, %v585_v33, %v584_v39  ;;  %v560_v48 = vsel %vm1128_vm8, %v559_v40, %v838_v7  ;;  %v563_v49 = vrot.slane %v841_v15, 5  ;;  %v870_v14 = vld [vmem:[%s1115_s5 + $0x8] sm:$0xff] }
 0x135   : > { %v610_v46 = vsel %vm493_vm9, %v609_v36, %v608_v42  ;;  %v588_v47 = vsel %vm489_vm2, %v587_v34, %v586_v43  ;;  %v562_v51 = vsel %vm485_vm0, %v561_v41, %v560_v48  ;;  %v569_v52 = vrot.slane %v844_v20, 2  ;;  %724 = vmatpush.bf16.msra.mxu2 %v870_v14  ;;  %v891_v34 = vld [vmem:[%s1116_s6] ss:$0 sm:$0xff] }
 0x136   : > { %v611_v50 = vpack.c.b16 %v610_v46, %v610_v46  ;;  %v567_v53 = vrot.slane %v843_v18, 3  ;;  %v564_v54 = vsel %vm487_vm1, %v563_v49, %v562_v51  ;;  %v590_v55 = vsel %vm491_vm4, %v589_v44, %v588_v47 }
 0x137   : > { %v566_v56 = vsel %vm489_vm2, %v565_v45, %v564_v54  ;;  %vm593_vm3 = vcmask 1043456   ;;  %vm594_vm10 = vsmask.f32 3328  ;;  %v591_v59 = vpack.c.b16 %v590_v55, %v590_v55 }
 0x138   : > { %612 = vrot.lane.b32.xlu1 %v611_v50, %s901_s12  ;;  %v568_v57 = vsel %vm491_vm4, %v567_v53, %v566_v56  ;;  %vm1065_vm14 = vmand %vm593_vm3, %vm594_vm10  ;;  %v631_v63 = vunpack.c.l.b16 %v625_v62  ;;  %vm620_vm0 = vcmask 130048   ;;  %vm635_vm1 = vcmask 195584   ;;  %s908_s12 = smov 32  }
 0x139   : > { %v570_v58 = vsel %vm493_vm9, %v569_v52, %v568_v57  ;;  %v596_v61 = vsel %vm1065_vm14, %v591_v59, 0  ;;  %vm1131_vm2 = vcmask 64512   ;;  %725 = vmatpush.bf16.msra.mxu2 %v869_v28  ;;  %vm688_vm9 = vcmask 261120  }
 0x13a   : > { %v633_v0 = vpack.c.b16 %v631_v63, %v631_v63  ;;  %v571_v4 = vpack.c.b16 %v570_v58, %v570_v58  ;;  %vm715_vm5 = vcmask 392192  }
 0x13c   : > { %v640_v1 = vsel %vm593_vm3, %v633_v0, 0  ;;  %v573_v5 = vsel %vm975_vm6, 0, %v571_v4 }
 0x13d   : > { %648 = vmatpush.bf16.msra.mxu1 %v640_v1 }
 0x140   : > { %615 = vrot.lane.b32.xlu1 %v596_v61, %s907_s23 }
 0x141   : > { %649 = vmatpush.bf16.msra.mxu1 %v868_v2 }
 0x1aa   : > { %v613_v3 = vpop.permute.xlu1 %612 }
 0x1ab   : > { %v619_v6 = vsel %vm1131_vm2, %v573_v5, %v613_v3 }
 0x1b2   : > { %v616_v7 = vpop.permute.xlu1 %615 }
 0x1b3   : > { %v622_v8 = vsel %vm620_vm0, %v619_v6, %v616_v7 }
 0x1b4   : > { %850 = vmatmul.msk.bf16.vlgmr.msra.gmra.mxu1 %vm635_vm1, %v622_v8 }
 0x231   : > { %v651_v11 = vpop.f32.mrf.mxu1 }
 0x232   : > { %v659_v12 = vadd.f32 %v890_v10, %v651_v11 }
 0x234   : > { %vm660_vm4 = vcmp.ge.f32.partialorder %v659_v12, 0.0  ;;  %v661_v13 = vmul.f32 0.01, %v659_v12 }
 0x236   : > { %v662_v15 = vsel %vm660_vm4, %v659_v12, %v661_v13 }
 0x237   : > { %v663_v16 = vpack.c.bf16 %v662_v15, %v662_v15 }
 0x239   : > { %v653_v17 = vpop.f32.mrf.mxu1  ;;  %v665_v18 = vunpack.c.l.b16 %v663_v16 }
 0x23b   : > { %v666_v20 = vpack.c.b16 %v665_v18, %v665_v18 }
 0x23d   : > { %680 = vrot.lane.b32.xlu2 %v666_v20, %s907_s23  ;;  %v668_v21 = vshrl.u32 %v666_v20, 16  ;;  %v671_v22 = vshll.u32 %v666_v20, 16 }
 0x23f   : > { %v676_v23 = vrot.slane %v671_v22, 1  ;;  %v670_v24 = vrot.slane %v668_v21, 7 }
 0x241   : > { %v677_v25 = vor.u32 %v676_v23, %v668_v21  ;;  %v673_v26 = vor.u32 %v671_v22, %v670_v24 }
 0x243   : > { %v679_v27 = vsel %vm1065_vm14, %v677_v25, 0  ;;  %v675_v30 = vsel %vm975_vm6, 0, %v673_v26  ;;  %vm1132_vm6 = vcmask 31744  }
 0x245   : > { %683 = vrot.lane.b32.xlu2 %v679_v27, %s908_s12 }
 0x297   : > { %v681_v29 = vpop.permute.xlu2 %680 }
 0x298   : > { %v687_v31 = vsel %vm620_vm0, %v675_v30, %v681_v29 }
 0x29f   : > { %v684_v32 = vpop.permute.xlu2 %683 }
 0x2a0   : > { %v690_v33 = vsel %vm688_vm9, %v687_v31, %v684_v32 }
 0x2a1   : > { %863 = vmatmul.msk.bf16.vlgmr.msra.gmra.mxu2 %vm715_vm5, %v690_v33 }
 0x324   : > { %v727_v35 = vpop.f32.mrf.mxu2 }
 0x325   : > { %v735_v36 = vadd.f32 %v891_v34, %v727_v35 }
 0x327   : > { %vm736_vm11 = vcmp.ge.f32.partialorder %v735_v36, 0.0  ;;  %v737_v19 = vmul.f32 0.01, %v735_v36 }
 0x329   : > { %v738_v37 = vsel %vm736_vm11, %v735_v36, %v737_v19 }
 0x32a   : > { %739 = vst.msk [vmem:[%s310_s22] sm:$0xff] %vm1132_vm6, %v738_v37 }
 0x32c   : > { %v729_v38 = vpop.f32.mrf.mxu2 }
 0x32d PF: > { %s19_s27 = sadd.s32 1, %s898_s27  }
 0x32e   : > { %p16_p4 = scmp.ge.s32.totalorder %s19_s27, 4  }
 0x330   :  { %18 = sbr.rel (!%p16_p4) target bundleno = 1 (0x1), region = 90 }

</bundles_post_ra>
